<compile_context>
chip_gen: v5e
topology: v5e:2x2
jax: 0.10.0
libtpu: 0.0.40
codegen_flags: <defaults>
</compile_context>

<pallas_src>
import jax
import jax.numpy as jnp
from jax.experimental import pallas as pl
from jax.experimental.pallas import tpu as pltpu


def _round_up(x, m):
    return ((x + m - 1) // m) * m


def _vmem_capacity_bytes():
    try:
        return int(pltpu.get_tpu_info().vmem_capacity_bytes)
    except Exception:
        return 64 * 1024 * 1024   # conservative fallback (v7x per-TC VMEM)


# ---------------------------------------------------------------------------
# Kernels
# ---------------------------------------------------------------------------
def _ffwd_resident_kernel(x_ref, w1_ref, b1_ref, w2_ref, b2_ref, o_ref):
    # x_ref : (tm, Cp)  bf16 row tile of flattened input
    # w1_ref: (Cp, Hp)  bf16, VMEM-resident across all row tiles
    # b1_ref: (1, Hp)   f32
    # w2_ref: (Hp, Cp)  bf16, VMEM-resident
    # b2_ref: (1, Cp)   f32
    # o_ref : (tm, Cp)  output row tile
    h = jnp.dot(x_ref[...], w1_ref[...], preferred_element_type=jnp.float32)
    h = jnp.maximum(h + b1_ref[...], 0.0)                       # bias + ReLU
    y = jnp.dot(h.astype(w2_ref.dtype), w2_ref[...],
                preferred_element_type=jnp.float32)
    # TODO(synk): training-mode dropout (p=0.2) would use pltpu.prng_seed +
    # pltpu.prng_random_bits; eval-mode dropout is identity, kept here.
    o_ref[...] = (y + b2_ref[...]).astype(o_ref.dtype)


def _ffwd_streamed_kernel(x_ref, w1_ref, b1_ref, w2_ref, b2_ref, o_ref, acc_ref):
    # Same math, but the hidden dim is streamed in tk-wide tiles (grid axis 1)
    # and accumulated into a (tm, Cp) f32 scratch.
    k = pl.program_id(1)

    @pl.when(k == 0)
    def _():
        acc_ref[...] = jnp.zeros_like(acc_ref)

    h = jnp.dot(x_ref[...], w1_ref[...], preferred_element_type=jnp.float32)
    h = jnp.maximum(h + b1_ref[...], 0.0)
    acc_ref[...] += jnp.dot(h.astype(w2_ref.dtype), w2_ref[...],
                            preferred_element_type=jnp.float32)

    @pl.when(k == pl.num_programs(1) - 1)
    def _():
        # TODO(synk): training-mode dropout (p=0.2) not implemented (eval mode).
        o_ref[...] = (acc_ref[...] + b2_ref[...]).astype(o_ref.dtype)


# ---------------------------------------------------------------------------
# Wrappers
# ---------------------------------------------------------------------------
def prepare_params(w1, b1, w2, b2, *, mxu_dtype=jnp.bfloat16):
    """Pad / cast the FeedForward weights ONCE (hoisted out of the hot path).

    w1: (C, 4C) in->out layout, b1: (4C,), w2: (4C, C), b2: (C,).
    Returns lane-dense (128-multiple) bf16 weights and f32 biases.
    """
    C, H = w1.shape
    Cp = _round_up(C, 128)
    Hp = _round_up(H, 128)
    w1p = jnp.zeros((Cp, Hp), mxu_dtype).at[:C, :H].set(w1.astype(mxu_dtype))
    w2p = jnp.zeros((Hp, Cp), mxu_dtype).at[:H, :C].set(w2.astype(mxu_dtype))
    b1p = jnp.zeros((1, Hp), jnp.float32).at[0, :H].set(b1.astype(jnp.float32))
    b2p = jnp.zeros((1, Cp), jnp.float32).at[0, :C].set(b2.astype(jnp.float32))
    return dict(w1=w1p, b1=b1p, w2=w2p, b2=b2p, C=C, H=H, Cp=Cp, Hp=Hp)


def feed_forward(x, params, *, tm=None, tk=None, out_dtype=None,
                 mxu_dtype=jnp.bfloat16):
    """x: (B, T, C); params from prepare_params. Returns (B, T, C)."""
    B, T, C = x.shape
    assert C == params["C"], "embedding dim mismatch with prepared params"
    H, Cp, Hp = params["H"], params["Cp"], params["Hp"]
    w1p, b1p, w2p, b2p = params["w1"], params["b1"], params["w2"], params["b2"]

    out_dtype = out_dtype or x.dtype
    M = B * T
    esz = jnp.dtype(mxu_dtype).itemsize
    out_esz = jnp.dtype(out_dtype).itemsize
    vmem_cap = _vmem_capacity_bytes()
    budget = int(0.7 * vmem_cap)          # leave headroom for the compiler

    # ---- row tile -----------------------------------------------------------
    if tm is None:
        if M <= 512:
            tm = _round_up(max(M, 8), 8)
        elif vmem_cap > (96 << 20):        # 128 MiB VMEM class (v5e / v6e)
            tm = 768                       # above the ~680 flop/byte crossover
        else:                              # 64 MiB/TC class (v7x)
            tm = 512
        # Keep at least 2 row tiles when M allows so the "parallel" row axis
        # can shard across 2 TensorCores (v7x megacore).
        if M > 512 and M < 2 * tm:
            tm = max(_round_up((M + 1) // 2, 8), 256)

    # ---- resident-vs-streamed decision -------------------------------------
    # Conservatively assume resident weight blocks may be double-buffered.
    weight_bytes = 2 * (2 * Cp * Hp * esz + (Hp + Cp) * 4)
    resident_work = (2 * tm * Cp * esz          # x row tile (2 bufs)
                     + 2 * tm * Cp * out_esz    # out row tile (2 bufs)
                     + tm * Hp * 4              # f32 hidden intermediate
                     + tm * Cp * 4)             # f32 pre-cast output temp
    use_resident = (weight_bytes + resident_work) <= budget

    if use_resident:
        # -------------------- resident-weight path --------------------------
        Mp = _round_up(M, tm)
        x2 = jnp.zeros((Mp, Cp), mxu_dtype).at[:M, :C].set(
            x.reshape(M, C).astype(mxu_dtype))

        vmem_limit = int(min(max(2 * (weight_bytes + resident_work), 32 << 20),
                             int(0.9 * vmem_cap)))
        cost = pl.CostEstimate(
            flops=4 * M * C * H,
            transcendentals=0,
            bytes_accessed=(M * Cp * esz            # x
                            + 2 * Cp * Hp * esz     # weights, read once
                            + (Hp + Cp) * 4         # biases
                            + M * Cp * out_esz),    # output
        )

        out = pl.pallas_call(
            _ffwd_resident_kernel,
            out_shape=jax.ShapeDtypeStruct((Mp, Cp), out_dtype),
            grid_spec=pltpu.PrefetchScalarGridSpec(
                num_scalar_prefetch=0,
                grid=(Mp // tm,),
                in_specs=[
                    pl.BlockSpec((tm, Cp), lambda i: (i, 0)),   # x row tile
                    pl.BlockSpec((Cp, Hp), lambda i: (0, 0)),   # w1 (resident)
                    pl.BlockSpec((1, Hp), lambda i: (0, 0)),    # b1 (resident)
                    pl.BlockSpec((Hp, Cp), lambda i: (0, 0)),   # w2 (resident)
                    pl.BlockSpec((1, Cp), lambda i: (0, 0)),    # b2 (resident)
                ],
                out_specs=pl.BlockSpec((tm, Cp), lambda i: (i, 0)),
            ),
            compiler_params=pltpu.CompilerParams(
                dimension_semantics=("parallel",),
                vmem_limit_bytes=vmem_limit,
            ),
            cost_estimate=cost,
        )(x2, w1p, b1p, w2p, b2p)

    else:
        # -------------------- streamed-weight path ---------------------------
        def stream_bytes(tm_, tk_):
            return (2 * tm_ * Cp * esz              # x (2 bufs)
                    + 3 * Cp * tk_ * esz            # w1 tiles (3 bufs)
                    + 3 * tk_ * Cp * esz            # w2 tiles (3 bufs)
                    + 2 * (tk_ + Cp) * 4            # b1 / b2 (2 bufs)
                    + 2 * tm_ * Cp * out_esz        # out (2 bufs)
                    + tm_ * Cp * 4                  # f32 accumulator
                    + tm_ * tk_ * 4)                # f32 hidden intermediate

        # Shrink tm if even the minimal-tk footprint does not fit.
        while tm > 256 and stream_bytes(tm, 128) > budget:
            tm = max(tm // 2, 256)

        if tk is None:
            # Largest 128-multiple divisor of Hp (<= 2048) that fits the budget.
            tk = 128
            for cand in range(min(Hp, 2048), 127, -128):
                if Hp % cand == 0 and stream_bytes(tm, cand) <= budget:
                    tk = cand
                    break
        assert Hp % tk == 0, "tk must evenly divide the padded hidden dim"

        Mp = _round_up(M, tm)
        x2 = jnp.zeros((Mp, Cp), mxu_dtype).at[:M, :C].set(
            x.reshape(M, C).astype(mxu_dtype))

        n_row_tiles = Mp // tm
        vmem_limit = int(min(max(int(1.5 * stream_bytes(tm, tk)), 32 << 20),
                             int(0.9 * vmem_cap)))
        cost = pl.CostEstimate(
            flops=4 * M * C * H,
            transcendentals=0,
            bytes_accessed=(M * Cp * esz
                            + n_row_tiles * (2 * Cp * Hp * esz + Hp * 4)
                            + Cp * 4
                            + M * Cp * out_esz),
        )

        out = pl.pallas_call(
            _ffwd_streamed_kernel,
            out_shape=jax.ShapeDtypeStruct((Mp, Cp), out_dtype),
            grid_spec=pltpu.PrefetchScalarGridSpec(
                num_scalar_prefetch=0,
                grid=(Mp // tm, Hp // tk),
                in_specs=[
                    pl.BlockSpec((tm, Cp), lambda i, k: (i, 0)),   # x row tile
                    pl.BlockSpec((Cp, tk), lambda i, k: (0, k),    # w1 H-tile
                                 pipeline_mode=pl.Buffered(3)),
                    pl.BlockSpec((1, tk), lambda i, k: (0, k)),    # b1 H-tile
                    pl.BlockSpec((tk, Cp), lambda i, k: (k, 0),    # w2 H-tile
                                 pipeline_mode=pl.Buffered(3)),
                    pl.BlockSpec((1, Cp), lambda i, k: (0, 0)),    # b2
                ],
                out_specs=pl.BlockSpec((tm, Cp), lambda i, k: (i, 0)),
                scratch_shapes=[pltpu.VMEM((tm, Cp), jnp.float32)],
            ),
            compiler_params=pltpu.CompilerParams(
                dimension_semantics=("parallel", "arbitrary"),
                vmem_limit_bytes=vmem_limit,
            ),
            cost_estimate=cost,
        )(x2, w1p, b1p, w2p, b2p)

    return out[:M, :C].reshape(B, T, C)


def init_params(key, n_embd):
    """Deterministic init matching nn.Linear shapes (stored transposed: in x out)."""
    h = 4 * n_embd
    k1, k2, k3, k4 = jax.random.split(key, 4)
    lim1 = 1.0 / jnp.sqrt(n_embd)
    lim2 = 1.0 / jnp.sqrt(h)
    w1 = jax.random.uniform(k1, (n_embd, h), jnp.float32, -lim1, lim1)
    b1 = jax.random.uniform(k2, (h,), jnp.float32, -lim1, lim1)
    w2 = jax.random.uniform(k3, (h, n_embd), jnp.float32, -lim2, lim2)
    b2 = jax.random.uniform(k4, (n_embd,), jnp.float32, -lim2, lim2)
    return w1, b1, w2, b2


if __name__ == "__main__":
    key = jax.random.PRNGKey(0)
    B, T, C = 2, 8, 32  # batch, seq, ff_n_embd
    kx, kp = jax.random.split(key)
    x = jax.random.normal(kx, (B, T, C), jnp.float32)
    w1, b1, w2, b2 = init_params(kp, C)

    params = prepare_params(w1, b1, w2, b2)     # pad/cast once, outside hot path
    y = feed_forward(x, params)
    jax.block_until_ready(y)

    # Reference (eval-mode dropout == identity), with the same bf16 MXU operand
    # numerics the kernel uses.
    xb = x.reshape(-1, C).astype(jnp.bfloat16)
    h_ref = jnp.maximum(
        jnp.dot(xb, w1.astype(jnp.bfloat16),
                preferred_element_type=jnp.float32) + b1, 0.0)
    ref = jnp.dot(h_ref.astype(jnp.bfloat16), w2.astype(jnp.bfloat16),
                  preferred_element_type=jnp.float32) + b2
    ref = ref.reshape(B, T, C)
    assert jnp.allclose(y, ref, atol=2e-2, rtol=2e-2), "mismatch vs reference"

    # Looser sanity check against the pure-f32 reference.
    ref32 = (jnp.maximum(x.reshape(-1, C) @ w1 + b1, 0.0) @ w2 + b2).reshape(B, T, C)
    assert jnp.allclose(y, ref32, atol=5e-2, rtol=5e-2), "mismatch vs f32 reference"

    print("KERNEL_OK")
</pallas_src>

<mosaic_0001>
module attributes {stable_mosaic.version = 11 : i64} {
  func.func @_ffwd_resident_kernel(%arg0: i32, %arg1: memref<16x128xbf16, #tpu.memory_space<vmem>>, %arg2: memref<128x128xbf16, #tpu.memory_space<vmem>>, %arg3: memref<1x128xf32, #tpu.memory_space<vmem>>, %arg4: memref<128x128xbf16, #tpu.memory_space<vmem>>, %arg5: memref<1x128xf32, #tpu.memory_space<vmem>>, %arg6: memref<16x128xf32, #tpu.memory_space<vmem>>) attributes {dimension_semantics = [#tpu.dimension_semantics<parallel>], iteration_bounds = array<i64: 1>, scalar_prefetch = 0 : i64, scratch_operands = 0 : i64, tpu.core_type = #tpu.core_type<tc>, window_params = [{transform_indices = @transform_0, window_bounds = array<i64: 16, 128>}, {pipeline_mode = #tpu.pipeline_mode<synchronous>, transform_indices = @transform_1, window_bounds = array<i64: 128, 128>}, {pipeline_mode = #tpu.pipeline_mode<synchronous>, transform_indices = @transform_2, window_bounds = array<i64: 1, 128>}, {pipeline_mode = #tpu.pipeline_mode<synchronous>, transform_indices = @transform_3, window_bounds = array<i64: 128, 128>}, {pipeline_mode = #tpu.pipeline_mode<synchronous>, transform_indices = @transform_4, window_bounds = array<i64: 1, 128>}, {transform_indices = @transform_5, window_bounds = array<i64: 16, 128>}]} {
    %c0 = arith.constant 0 : index
    %c0_0 = arith.constant 0 : index
    %0 = vector.load %arg1[%c0, %c0_0] : memref<16x128xbf16, #tpu.memory_space<vmem>>, vector<16x128xbf16>
    %c0_1 = arith.constant 0 : index
    %c0_2 = arith.constant 0 : index
    %1 = vector.load %arg2[%c0_1, %c0_2] : memref<128x128xbf16, #tpu.memory_space<vmem>>, vector<128x128xbf16>
    %cst = arith.constant dense<0.000000e+00> : vector<16x128xf32>
    %2 = tpu.matmul %0, %1, %cst {dimension_numbers = #tpu.dot_dimension_numbers<[1], [0], [0], [1], [0, 0, 1, 1], [], []>} : vector<16x128xbf16>, vector<128x128xbf16>, vector<16x128xf32> -> vector<16x128xf32>
    %c0_3 = arith.constant 0 : index
    %c0_4 = arith.constant 0 : index
    %3 = vector.load %arg3[%c0_3, %c0_4] : memref<1x128xf32, #tpu.memory_space<vmem>>, vector<1x128xf32>
    %4 = vector.broadcast %3 : vector<1x128xf32> to vector<16x128xf32>
    %5 = arith.addf %2, %4 : vector<16x128xf32>
    %cst_5 = arith.constant 0.000000e+00 : f32
    %6 = vector.broadcast %cst_5 : f32 to vector<16x128xf32>
    %7 = arith.maximumf %5, %6 : vector<16x128xf32>
    %8 = arith.truncf %7 : vector<16x128xf32> to vector<16x128xbf16>
    %c0_6 = arith.constant 0 : index
    %c0_7 = arith.constant 0 : index
    %9 = vector.load %arg4[%c0_6, %c0_7] : memref<128x128xbf16, #tpu.memory_space<vmem>>, vector<128x128xbf16>
    %cst_8 = arith.constant dense<0.000000e+00> : vector<16x128xf32>
    %10 = tpu.matmul %8, %9, %cst_8 {dimension_numbers = #tpu.dot_dimension_numbers<[1], [0], [0], [1], [0, 0, 1, 1], [], []>} : vector<16x128xbf16>, vector<128x128xbf16>, vector<16x128xf32> -> vector<16x128xf32>
    %c0_9 = arith.constant 0 : index
    %c0_10 = arith.constant 0 : index
    %11 = vector.load %arg5[%c0_9, %c0_10] : memref<1x128xf32, #tpu.memory_space<vmem>>, vector<1x128xf32>
    %12 = vector.broadcast %11 : vector<1x128xf32> to vector<16x128xf32>
    %13 = arith.addf %10, %12 : vector<16x128xf32>
    %c0_11 = arith.constant 0 : index
    %c0_12 = arith.constant 0 : index
    %14 = vector.load %arg6[%c0_11, %c0_12] : memref<16x128xf32, #tpu.memory_space<vmem>>, vector<16x128xf32>
    tpu.vector_store %arg6[%c0_11, %c0_12], %13 {strides = array<i32>} : memref<16x128xf32, #tpu.memory_space<vmem>>, vector<16x128xf32>,
    return
  }
  func.func @transform_0(%arg0: i32) -> (i32, i32) {
    %c0_i32 = arith.constant 0 : i32
    %c0_i32_0 = arith.constant 0 : i32
    return %arg0, %c0_i32 : i32, i32
  }
  func.func @transform_1(%arg0: i32) -> (i32, i32) {
    %c0_i32 = arith.constant 0 : i32
    %c0_i32_0 = arith.constant 0 : i32
    %c0_i32_1 = arith.constant 0 : i32
    return %c0_i32, %c0_i32_0 : i32, i32
  }
  func.func @transform_2(%arg0: i32) -> (i32, i32) {
    %c0_i32 = arith.constant 0 : i32
    %c0_i32_0 = arith.constant 0 : i32
    %c0_i32_1 = arith.constant 0 : i32
    return %c0_i32, %c0_i32_0 : i32, i32
  }
  func.func @transform_3(%arg0: i32) -> (i32, i32) {
    %c0_i32 = arith.constant 0 : i32
    %c0_i32_0 = arith.constant 0 : i32
    %c0_i32_1 = arith.constant 0 : i32
    return %c0_i32, %c0_i32_0 : i32, i32
  }
  func.func @transform_4(%arg0: i32) -> (i32, i32) {
    %c0_i32 = arith.constant 0 : i32
    %c0_i32_0 = arith.constant 0 : i32
    %c0_i32_1 = arith.constant 0 : i32
    return %c0_i32, %c0_i32_0 : i32, i32
  }
  func.func @transform_5(%arg0: i32) -> (i32, i32) {
    %c0_i32 = arith.constant 0 : i32
    %c0_i32_0 = arith.constant 0 : i32
    return %arg0, %c0_i32 : i32, i32
  }
}

</mosaic_0001>

<bundles_post_ra>
// kernel: tpu_custom_call.1
= control target key start
LH: loop header
LB: loop body
LE: loop exit
PB: predicated region body
PF: predicated region fallthrough
CT: control target
= control target key end

     0   :  { %10 = vsyncpa [#allocation3], 0  ;;  %s518_s0 = inlined_call_operand.hbm [shape: bf16[16,128], index: 0, kind: input, shape index: {}]   ;;  %s519_s1 = inlined_call_operand.hbm [shape: bf16[128,128], index: 1, kind: input, shape index: {}]   ;;  %s520_s2 = inlined_call_operand.vmem [shape: f32[1,128], index: 2, kind: input, shape index: {}]   ;;  %s521_s3 = inlined_call_operand.hbm [shape: bf16[128,128], index: 3, kind: input, shape index: {}]   ;;  %s522_s4 = inlined_call_operand.vmem [shape: f32[1,128], index: 4, kind: input, shape index: {}]   ;;  %s523_s5 = inlined_call_operand.hbm [shape: f32[16,128], index: 5, kind: output, shape index: {}]  }
   0x1   :  { %11 = vsyncpa [#allocation6], 0 }
   0x2   :  { %12 = vsyncpa [#allocation4], 0  ;;  %s30_s20 = sshll.u32 %s519_s1, 4  ;;  %s462_s21 = smov [#allocation5]   ;;  %s31_s20 = int_to_ptr.hbm [resolvable:$true] %s30_s20 }
   0x3   :  { %s32_s22 = sshll.u32 %s462_s21, 4  ;;  %s17_s25 = sshll.u32 %s518_s0, 4  ;;  %s33_s22 = int_to_ptr.vmem [resolvable:$true] %s32_s22  ;;  %s18_s25 = int_to_ptr.hbm [resolvable:$true] %s17_s25 }
   0x4   :  { %s463_s26 = smov 64   ;;  %s464_s27 = smov 4  }
   0x5   :  { %38 = dma.hbm_to_vmem [thread:$0]  %s31_s20, 1024, %s33_s22, [#allocation6], %s463_s26, %s463_s26, %s464_s27  }
   0x6   :  { %s465_s28 = smov [#allocation2]   ;;  %s45_s7 = sshll.u32 %s521_s3, 4  ;;  %s46_s7 = int_to_ptr.hbm [resolvable:$true] %s45_s7 }
   0x7   :  { %s19_s29 = sshll.u32 %s465_s28, 4  ;;  %s466_s1 = smov [#allocation7]   ;;  %s20_s29 = int_to_ptr.vmem [resolvable:$true] %s19_s29 }
   0x8   :  { %25 = dma.hbm_to_vmem [thread:$0]  %s18_s25, 128, %s20_s29, [#allocation3], %s463_s26, %s463_s26, %s464_s27  }
   0x9   :  { %s47_s8 = sshll.u32 %s466_s1, 4  ;;  %s48_s8 = int_to_ptr.vmem [resolvable:$true] %s47_s8 }
   0xa   :  { %53 = dma.hbm_to_vmem [thread:$0]  %s46_s7, 1024, %s48_s8, [#allocation6], %s463_s26, %s463_s26, %s464_s27  }
   0xb   :  { %456 = dma.done.wait [#allocation3], 128  }
   0xc   :  { %457 = vsyncadd [#allocation3], 4294967168 }
   0xd   :  { %458 = dma.done.wait [#allocation6], 2048  }
   0xe   :  { %459 = vsyncadd [#allocation6], 4294965248  ;;  %v341_v0 = vld [vmem:[#allocation5 + $0x38] sm:$0xff]  ;;  %v340_v1 = vld [vmem:[#allocation5 + $0x30] sm:$0xff]  ;;  %s467_s11 = smov [#allocation8]   ;;  %s468_s15 = smov 128  }
   0xf   :  { %144 = vmatpush.bf16.msra.mxu0 %v341_v0  ;;  %v349_v2 = vld [vmem:[#allocation7 + $0x38] sm:$0xff]  ;;  %v348_v3 = vld [vmem:[#allocation7 + $0x30] sm:$0xff]  ;;  %v339_v4 = vld [vmem:[#allocation5 + $0x28] sm:$0xff]  ;;  %s249_s12 = sshll.u32 %s467_s11, 4  ;;  %s469_s16 = smov 8   ;;  %s250_s12 = int_to_ptr.vmem [resolvable:$true] %s249_s12 }
  0x10   :  { %229 = vmatpush.bf16.msra.mxu1 %v349_v2  ;;  %v347_v5 = vld [vmem:[#allocation7 + $0x28] sm:$0xff]  ;;  %v338_v6 = vld [vmem:[#allocation5 + $0x20] sm:$0xff]  ;;  %v337_v8 = vld [vmem:[#allocation5 + $0x18] sm:$0xff] }
  0x11   :  { %v346_v7 = vld [vmem:[#allocation7 + $0x20] sm:$0xff]  ;;  %v336_v9 = vld [vmem:[#allocation5 + $0x10] sm:$0xff]  ;;  %v335_v10 = vld [vmem:[#allocation5 + $0x8] sm:$0xff] }
  0x12   :  { %v334_v11 = vld [vmem:[#allocation5] sm:$0xff]  ;;  %v333_v12 = vld [vmem:[#allocation2] sm:$0xff]  ;;  %v344_v14 = vld [vmem:[#allocation7 + $0x10] sm:$0xff] }
  0x13   :  { %145 = vmatpush.bf16.msra.mxu0 %v340_v1  ;;  %v345_v13 = vld [vmem:[#allocation7 + $0x18] sm:$0xff]  ;;  %v343_v15 = vld [vmem:[#allocation7 + $0x8] sm:$0xff]  ;;  %v342_v16 = vld [vmem:[#allocation7] sm:$0xff] }
  0x14   :  { %230 = vmatpush.bf16.msra.mxu1 %v348_v3  ;;  %v358_v18 = vld [vmem:[%s520_s2] ss:$0 sm:$0xff]  ;;  %s251_s2 = sshll.u32 %s523_s5, 4  ;;  %s252_s2 = int_to_ptr.hbm [resolvable:$true] %s251_s2 }
  0x15   :  { %v359_v25 = vld [vmem:[%s522_s4] ss:$0 sm:$0xff] }
  0x17   :  { %146 = vmatpush.bf16.msra.mxu0 %v339_v4 }
  0x18   :  { %231 = vmatpush.bf16.msra.mxu1 %v347_v5 }
  0x1b   :  { %147 = vmatpush.bf16.msra.mxu0 %v338_v6 }
  0x1c   :  { %232 = vmatpush.bf16.msra.mxu1 %v346_v7 }
  0x1f   :  { %148 = vmatpush.bf16.msra.mxu0 %v337_v8 }
  0x20   :  { %233 = vmatpush.bf16.msra.mxu1 %v345_v13 }
  0x23   :  { %149 = vmatpush.bf16.msra.mxu0 %v336_v9 }
  0x24   :  { %234 = vmatpush.bf16.msra.mxu1 %v344_v14 }
  0x27   :  { %150 = vmatpush.bf16.msra.mxu0 %v335_v10 }
  0x28   :  { %235 = vmatpush.bf16.msra.mxu1 %v343_v15 }
  0x2b   :  { %151 = vmatpush.bf16.msra.mxu0 %v334_v11 }
  0x2c   :  { %236 = vmatpush.bf16.msra.mxu1 %v342_v16 }
  0x2e   :  { %152 = vmatmul.bf16.vlgmr.msra.gmra.mxu0 %v333_v12 }
  0xab   :  { %v153_v17 = vpop.f32.mrf.mxu0 }
  0xac   :  { %v154_v19 = vadd.f32 %v358_v18, %v153_v17 }
  0xae   :  { %v158_v22 = vmax.f32 %v154_v19, 0.0 }
  0xb3   :  { %v155_v20 = vpop.f32.mrf.mxu0 }
  0xb4   :  { %v156_v21 = vadd.f32 %v358_v18, %v155_v20 }
  0xb6   :  { %v159_v23 = vmax.f32 %v156_v21, 0.0 }
  0xb8   :  { %v160_v24 = vpack.c.bf16 %v159_v23, %v158_v22 }
  0xba   :  { %237 = vmatmul.bf16.vlgmr.msra.gmra.mxu1 %v160_v24 }
 0x137   :  { %v238_v26 = vpop.f32.mrf.mxu1 }
 0x138   :  { %v239_v27 = vadd.f32 %v359_v25, %v238_v26 }
 0x13a   :  { %243 = vst [vmem:[#allocation8] sm:$0xff] %v239_v27 }
 0x13f   :  { %v240_v28 = vpop.f32.mrf.mxu1 }
 0x140   :  { %v241_v29 = vadd.f32 %v359_v25, %v240_v28 }
 0x142   :  { %244 = vst [vmem:[#allocation8 + $0x8] sm:$0xff] %v241_v29 }
 0x143   :  { %257 = dma.vmem_to_hbm [thread:$0]  %s250_s12, 256, %s252_s2, [#allocation4], %s468_s15, %s468_s15, %s469_s16  }
 0x144   :  { %460 = dma.done.wait [#allocation4], 256  }
 0x145   :  { %461 = vsyncadd [#allocation4], 4294967040 }
 0x146   :  { %262 = vsyncpa [#allocation3], 1 }
 0x147   :  { %263 = vsyncpa [#allocation6], 1 }
 0x148   :  { %264 = vsyncpa [#allocation4], 1 }

</bundles_post_ra>
